<compile_context>
chip_gen: v5e
topology: v5e:2x2
jax: 0.10.0
libtpu: 0.0.40
codegen_flags: <defaults>
</compile_context>

<pallas_src>
import math

import jax
import jax.numpy as jnp
from jax.experimental import pallas as pl
from jax.experimental.pallas import tpu as pltpu


def _round_up(x, m):
    return ((x + m - 1) // m) * m


def _vmem_capacity_bytes():
    """Physical VMEM per TensorCore (v5e/v6e: 128 MiB, v7x: 64 MiB)."""
    try:
        return int(pltpu.get_tpu_info().vmem_capacity_bytes)
    except Exception:
        pass
    try:
        kind = jax.devices()[0].device_kind.lower()
        if "v7" in kind:
            return 64 * 1024 * 1024
        return 128 * 1024 * 1024
    except Exception:
        return 64 * 1024 * 1024


def _backproject_residual_kernel(x_ref, a_ref, proj_ref, back_ref):
    """One grid step over a (TP, HWp) tile of the system matrix A.

    grid = (num_splits, steps_per_split); back_ref ((1, Bp, HWp), f32) is the
    per-split partial accumulator:
        k == 0     : back = 0
        every step : back += (x @ A_k^T - proj_k) @ A_k
    """
    k = pl.program_id(1)

    @pl.when(k == 0)
    def _init():
        back_ref[...] = jnp.zeros_like(back_ref)

    x16 = x_ref[...]            # (Bp, HWp) bf16, resident (single-buffered)
    a = a_ref[...]              # (TP, HWp) bf16, streamed tile

    # sino tile: (Bp, TP) = x @ A_k^T  (A consumed in its natural (P, HW) layout)
    sino = jax.lax.dot_general(
        x16, a,
        dimension_numbers=(((1,), (1,)), ((), ())),
        preferred_element_type=jnp.float32,
    )
    temp = (sino - proj_ref[...]).astype(jnp.bfloat16)          # (Bp, TP)

    # back partial: (Bp, HWp) = temp @ A_k  (second matmul on the SAME A tile)
    back_ref[0] += jax.lax.dot_general(
        temp, a,
        dimension_numbers=(((1,), (0,)), ((), ())),
        preferred_element_type=jnp.float32,
    )


class PrjPallasModule:
    """Pallas/TPU analogue of the PyTorch `prj_module` forward pass."""

    def __init__(self, sys_matrix, weight=0.05, *, tile_p=None, max_batch=8):
        p, hw = sys_matrix.shape
        self.p, self.hw = int(p), int(hw)
        self.weight = jnp.asarray(weight, jnp.float32).reshape(())

        hwp = _round_up(self.hw, 128)
        bp_budget = _round_up(max(int(max_batch), 16), 16)

        # ---- generation-aware tile planning --------------------------------
        cap = _vmem_capacity_bytes()
        if cap <= 64 * 1024 * 1024:            # v7x: leave headroom under 64 MiB
            plan_cap = 52 * 1024 * 1024
        else:                                  # v5e / v6e: 128 MiB physical
            plan_cap = 112 * 1024 * 1024
        slack = 2 * 1024 * 1024                # Mosaic internal scratch, sems, ...
        # Resident, single-buffered blocks: x (bf16) + back accumulator (f32).
        resident = bp_budget * hwp * 2 + bp_budget * hwp * 4
        # Per unit of TP: A tile (bf16, double-buffered) + proj tile (f32, 2 bufs).
        per_tp = 2 * hwp * 2 + 2 * bp_budget * 4

        tp = (max(plan_cap - resident - slack, 0) // per_tp // 128) * 128
        tp = min(tp, _round_up(self.p, 128))
        if tile_p is not None:
            tp = min(tp, _round_up(int(tile_p), 128)) if tp >= 128 else _round_up(int(tile_p), 128)
        if tp < 128:
            # TODO(synk): two-pass HW-tiled fallback for very large images where
            # even a (128, HWp) A tile exceeds the VMEM budget; clamping for now.
            tp = 128
        tp = int(tp)

        base_steps = -(-self.p // tp)
        # Leading "parallel" axis feeds both TensorCores on v7x; on single-TC
        # chips it is just a serial loop with the same total number of A tiles.
        num_splits = 2 if base_steps >= 2 else 1
        steps_per_split = -(-base_steps // num_splits)
        pp = num_splits * steps_per_split * tp

        need = resident + slack + tp * per_tp
        vmem_limit = int(min(max(need, 16 * 1024 * 1024), cap - 4 * 1024 * 1024))

        self.tp, self.hwp, self.pp = tp, hwp, pp
        self.num_splits, self.steps_per_split = num_splits, steps_per_split
        self.vmem_limit = vmem_limit

        # ---- A prepared ONCE: bf16 cast + pad, reused across every forward --
        a16 = jnp.asarray(sys_matrix, jnp.float32).astype(jnp.bfloat16)
        self.a_pad = jnp.pad(a16, ((0, pp - self.p), (0, hwp - self.hw)))

        p_, hw_ = self.p, self.hw

        def fwd(a_pad, weight, x_img, proj):
            n, c, h, w = x_img.shape
            b = n * c
            bp = _round_up(max(b, 16), 16)      # bf16 operands pack as (16, 128)

            x_flat = x_img.reshape(b, hw_).astype(jnp.float32)
            x16_pad = jnp.pad(x_flat.astype(jnp.bfloat16),
                              ((0, bp - b), (0, hwp - hw_)))
            proj_pad = jnp.pad(proj.reshape(b, p_).astype(jnp.float32),
                               ((0, bp - b), (0, pp - p_)))

            cost = pl.CostEstimate(
                flops=4 * bp * pp * hwp,
                transcendentals=0,
                bytes_accessed=int(pp * hwp * 2          # A streamed once (bf16)
                                   + bp * hwp * 2        # x in (bf16)
                                   + num_splits * bp * hwp * 4   # partial back out
                                   + bp * pp * 4),       # proj
            )

            back_parts = pl.pallas_call(
                _backproject_residual_kernel,
                out_shape=jax.ShapeDtypeStruct((num_splits, bp, hwp), jnp.float32),
                grid=(num_splits, steps_per_split),
                in_specs=[
                    pl.BlockSpec((bp, hwp), lambda s, k: (0, 0),
                                 pipeline_mode=pl.Buffered(1)),          # x: resident
                    pl.BlockSpec((tp, hwp),
                                 lambda s, k: (s * steps_per_split + k, 0)),  # A stream
                    pl.BlockSpec((bp, tp),
                                 lambda s, k: (0, s * steps_per_split + k)),  # proj tile
                ],
                out_specs=pl.BlockSpec((1, bp, hwp), lambda s, k: (s, 0, 0),
                                       pipeline_mode=pl.Buffered(1)),    # accumulator
                compiler_params=pltpu.CompilerParams(
                    dimension_semantics=("parallel", "arbitrary"),
                    vmem_limit_bytes=vmem_limit,
                ),
                cost_estimate=cost,
            )(x16_pad, a_pad, proj_pad)

            back = jnp.sum(back_parts, axis=0)[:b, :hw_]
            out = x_flat - weight * back                 # finalize in f32 (XLA epilogue)
            return out.reshape(n, c, h, w)

        self._forward = jax.jit(fwd)

    def __call__(self, x_img, proj):
        return self._forward(self.a_pad, self.weight, x_img, proj)


def build_system_matrix(n_views, n_det, h, w):
    """Deterministic stand-in for the ctlib fan/parallel-beam system matrix.

    Row (v, d) is a smooth ray-weighting over the image grid, normalized so
    projection/backprojection have reasonable scale.
    """
    hw = h * w
    ys, xs = jnp.meshgrid(
        (jnp.arange(h, dtype=jnp.float32) - (h - 1) / 2.0) / h,
        (jnp.arange(w, dtype=jnp.float32) - (w - 1) / 2.0) / w,
        indexing="ij",
    )
    angles = jnp.arange(n_views, dtype=jnp.float32) * (math.pi / n_views)
    dets = (jnp.arange(n_det, dtype=jnp.float32) - (n_det - 1) / 2.0) / n_det

    cos_a = jnp.cos(angles)[:, None, None, None]
    sin_a = jnp.sin(angles)[:, None, None, None]
    t = xs[None, None] * cos_a + ys[None, None] * sin_a
    dist = t - dets[None, :, None, None]
    sigma = 1.0 / max(h, w)
    weights = jnp.exp(-(dist ** 2) / (2.0 * sigma ** 2))
    a = weights.reshape(n_views * n_det, hw)
    a = a / (jnp.sum(a, axis=1, keepdims=True) + 1e-6)
    return a.astype(jnp.float32)


def reference_forward(x_img, proj, weight, sys_matrix):
    """Pure-JAX reference with the same numerics as the kernel
    (bf16 matmul operands, f32 accumulation, f32 finalize)."""
    n, c, h, w = x_img.shape
    b, hw = n * c, h * w
    p = sys_matrix.shape[0]
    x = x_img.reshape(b, hw).astype(jnp.float32)
    a16 = sys_matrix.astype(jnp.bfloat16)
    sino = jax.lax.dot_general(
        x.astype(jnp.bfloat16), a16,
        dimension_numbers=(((1,), (1,)), ((), ())),
        preferred_element_type=jnp.float32)
    temp = (sino - proj.reshape(b, p).astype(jnp.float32)).astype(jnp.bfloat16)
    back = jax.lax.dot_general(
        temp, a16,
        dimension_numbers=(((1,), (0,)), ((), ())),
        preferred_element_type=jnp.float32)
    out = x - jnp.asarray(weight, jnp.float32).reshape(()) * back
    return out.reshape(n, c, h, w)


if __name__ == "__main__":
    key = jax.random.PRNGKey(0)
    k1, k2 = jax.random.split(key, 2)

    # small CT geometry: 16x16 image, 16 views x 32 detectors
    N, C, H, W = 2, 1, 16, 16
    N_VIEWS, N_DET = 16, 32
    P = N_VIEWS * N_DET                      # 512

    A = build_system_matrix(N_VIEWS, N_DET, H, W)            # (P, HW)
    x = jax.random.normal(k1, (N, C, H, W), dtype=jnp.float32)
    proj = jax.random.normal(k2, (N, C, P), dtype=jnp.float32)
    weight = jnp.array([0.05], dtype=jnp.float32)            # nn.Parameter(Tensor(1))

    # tile_p=128 -> 4 P-tiles -> grid (2 splits x 2 steps): exercises the
    # parallel split AND the init/accumulate reduction path even at toy sizes.
    module = PrjPallasModule(A, weight=weight, tile_p=128, max_batch=N)

    out = jax.block_until_ready(module(x, proj))

    ref = reference_forward(x, proj, weight, A)
    assert out.shape == (N, C, H, W)
    max_err = float(jnp.max(jnp.abs(out - ref)))
    assert jnp.allclose(out, ref, atol=2e-3, rtol=2e-3), (
        "mismatch vs reference: max abs err = %e" % max_err)

    print("KERNEL_OK")
</pallas_src>

<mosaic_0001>
module attributes {stable_mosaic.version = 11 : i64} {
  func.func @_backproject_residual_kernel(%arg0: i32, %arg1: i32, %arg2: memref<16x256xbf16, #tpu.memory_space<vmem>>, %arg3: memref<128x256xbf16, #tpu.memory_space<vmem>>, %arg4: memref<16x128xf32, #tpu.memory_space<vmem>>, %arg5: memref<1x16x256xf32, #tpu.memory_space<vmem>>) attributes {dimension_semantics = [#tpu.dimension_semantics<parallel>, #tpu.dimension_semantics<arbitrary>], iteration_bounds = array<i64: 2, 2>, scalar_prefetch = 0 : i64, scratch_operands = 0 : i64, tpu.core_type = #tpu.core_type<tc>, window_params = [{pipeline_mode = #tpu.pipeline_mode<synchronous>, transform_indices = @transform_0, window_bounds = array<i64: 16, 256>}, {transform_indices = @transform_1, window_bounds = array<i64: 128, 256>}, {transform_indices = @transform_2, window_bounds = array<i64: 16, 128>}, {pipeline_mode = #tpu.pipeline_mode<synchronous>, transform_indices = @transform_3, window_bounds = array<i64: 1, 16, 256>}]} {
    %c0_i32 = arith.constant 0 : i32
    %0 = arith.cmpi eq, %arg1, %c0_i32 : i32
    %1 = arith.extui %0 : i1 to i32
    %c0_i32_0 = arith.constant 0 : i32
    %2 = arith.cmpi ne, %1, %c0_i32_0 : i32
    scf.if %2 {
      %cst_13 = arith.constant 0.000000e+00 : f32
      %16 = vector.broadcast %cst_13 : f32 to vector<1x16x256xf32>
      %c0_14 = arith.constant 0 : index
      %c0_15 = arith.constant 0 : index
      %c0_16 = arith.constant 0 : index
      %17 = vector.load %arg5[%c0_14, %c0_15, %c0_16] : memref<1x16x256xf32, #tpu.memory_space<vmem>>, vector<1x16x256xf32>
      tpu.vector_store %arg5[%c0_14, %c0_15, %c0_16], %16 {strides = array<i32>} : memref<1x16x256xf32, #tpu.memory_space<vmem>>, vector<1x16x256xf32>,
    } else {
    }
    %c0 = arith.constant 0 : index
    %c0_1 = arith.constant 0 : index
    %3 = vector.load %arg2[%c0, %c0_1] : memref<16x256xbf16, #tpu.memory_space<vmem>>, vector<16x256xbf16>
    %c0_2 = arith.constant 0 : index
    %c0_3 = arith.constant 0 : index
    %4 = vector.load %arg3[%c0_2, %c0_3] : memref<128x256xbf16, #tpu.memory_space<vmem>>, vector<128x256xbf16>
    %cst = arith.constant dense<0.000000e+00> : vector<16x128xf32>
    %5 = tpu.matmul %3, %4, %cst {dimension_numbers = #tpu.dot_dimension_numbers<[1], [1], [0], [0], [0, 0, 1, 0], [], []>} : vector<16x256xbf16>, vector<128x256xbf16>, vector<16x128xf32> -> vector<16x128xf32>
    %c0_4 = arith.constant 0 : index
    %c0_5 = arith.constant 0 : index
    %6 = vector.load %arg4[%c0_4, %c0_5] : memref<16x128xf32, #tpu.memory_space<vmem>>, vector<16x128xf32>
    %7 = arith.subf %5, %6 : vector<16x128xf32>
    %8 = arith.truncf %7 : vector<16x128xf32> to vector<16x128xbf16>
    %c0_6 = arith.constant 0 : index
    %c0_7 = arith.constant 0 : index
    %c0_8 = arith.constant 0 : index
    %9 = vector.load %arg5[%c0_6, %c0_7, %c0_8] : memref<1x16x256xf32, #tpu.memory_space<vmem>>, vector<1x16x256xf32>
    %10 = vector.shape_cast %9 : vector<1x16x256xf32> to vector<16x256xf32>
    %cst_9 = arith.constant dense<0.000000e+00> : vector<16x256xf32>
    %11 = tpu.matmul %8, %4, %cst_9 {dimension_numbers = #tpu.dot_dimension_numbers<[1], [0], [0], [1], [0, 0, 1, 1], [], []>} : vector<16x128xbf16>, vector<128x256xbf16>, vector<16x256xf32> -> vector<16x256xf32>
    %12 = arith.addf %10, %11 : vector<16x256xf32>
    %c0_10 = arith.constant 0 : index
    %c0_11 = arith.constant 0 : index
    %c0_12 = arith.constant 0 : index
    %13 = vector.load %arg5[%c0_10, %c0_11, %c0_12] : memref<1x16x256xf32, #tpu.memory_space<vmem>>, vector<1x16x256xf32>
    %14 = vector.shape_cast %13 : vector<1x16x256xf32> to vector<16x256xf32>
    %15 = vector.shape_cast %12 : vector<16x256xf32> to vector<1x16x256xf32>
    tpu.vector_store %arg5[%c0_10, %c0_11, %c0_12], %15 {strides = array<i32>} : memref<1x16x256xf32, #tpu.memory_space<vmem>>, vector<1x16x256xf32>,
    return
  }
  func.func @transform_0(%arg0: i32, %arg1: i32) -> (i32, i32) {
    %c0_i32 = arith.constant 0 : i32
    %c0_i32_0 = arith.constant 0 : i32
    %c0_i32_1 = arith.constant 0 : i32
    return %c0_i32, %c0_i32_0 : i32, i32
  }
  func.func @transform_1(%arg0: i32, %arg1: i32) -> (i32, i32) {
    %c2_i32 = arith.constant 2 : i32
    %0 = arith.muli %arg0, %c2_i32 : i32
    %1 = arith.addi %0, %arg1 : i32
    %c0_i32 = arith.constant 0 : i32
    %c0_i32_0 = arith.constant 0 : i32
    return %1, %c0_i32 : i32, i32
  }
  func.func @transform_2(%arg0: i32, %arg1: i32) -> (i32, i32) {
    %c2_i32 = arith.constant 2 : i32
    %0 = arith.muli %arg0, %c2_i32 : i32
    %1 = arith.addi %0, %arg1 : i32
    %c0_i32 = arith.constant 0 : i32
    %c0_i32_0 = arith.constant 0 : i32
    return %c0_i32, %1 : i32, i32
  }
  func.func @transform_3(%arg0: i32, %arg1: i32) -> (i32, i32, i32) {
    %c0_i32 = arith.constant 0 : i32
    %c0_i32_0 = arith.constant 0 : i32
    %c0_i32_1 = arith.constant 0 : i32
    return %arg0, %c0_i32, %c0_i32_0 : i32, i32, i32
  }
}

</mosaic_0001>

<bundles_post_ra>
// kernel: fwd.1
= control target key start
LH: loop header
LB: loop body
LE: loop exit
PB: predicated region body
PF: predicated region fallthrough
CT: control target
= control target key end

     0   :  { %8 = vsyncpa [#allocation3], 0  ;;  %s1056_s0 = inlined_call_operand.vmem [shape: bf16[16,256], index: 0, kind: input, shape index: {}]   ;;  %s1057_s1 = inlined_call_operand.hbm [shape: bf16[512,256], index: 1, kind: input, shape index: {}]   ;;  %s1058_s2 = inlined_call_operand.vmem [shape: f32[16,512], index: 2, kind: input, shape index: {}]   ;;  %s1059_s3 = inlined_call_operand.vmem [shape: f32[2,16,256], index: 3, kind: output, shape index: {}]  }
   0x1   :  { %10 = vsyncpa [#allocation3 + $0x1], 0  ;;  %s872_s12 = smov 0   ;;  %s874_s13 = smov 0  }
   0x2   :  { %s876_s14 = smov 0   ;;  %s878_s15 = smov 0  }
   0x3   :  { %s880_s16 = smov 0   ;;  %s882_s17 = smov 0  }
   0x4   :  { %s884_s18 = smov 0   ;;  %s886_s19 = smov 0  }
   0x5 LB: > { %s25_s20 = sadd.s32 1, %s839_s17  ;;  %s28_s21 = sadd.s32 1, %s843_s18  ;;  %s847_s19 = sphi %s886_s19, %s16_s19   ;;  %s843_s18 = sphi %s884_s18, %s1074_s18   ;;  %s839_s17 = sphi %s882_s17, %s1073_s17   ;;  %s835_s16 = sphi %s880_s16, %s1072_s16   ;;  %s831_s15 = sphi %s878_s15, %s1071_s15   ;;  %s827_s14 = sphi %s876_s14, %s1070_s14   ;;  %s823_s13 = sphi %s874_s13, %s1069_s13   ;;  %s819_s12 = sphi %s872_s12, %s1068_s12  }
   0x6   : > { %p26_p0 = scmp.ge.s32.totalorder %s25_s20, 2  ;;  %s568_s22 = sadd.s32 4294967295, %s847_s19  }
   0x7   : > { %s569_s23 = sshll.u32 %s843_s18, 1  ;;  %p67_p1 = scmp.ne.s32.totalorder %s827_s14, %s823_s13 }
   0x8   : > { %s1076_s20 = smov (%p26_p0, %s25_s20), 0  ;;  %s1078_s21 = smov (!%p26_p0, %s28_s21), %s843_s18 }
   0x9   : > { %1062 = sst [smem:[#allocation6_spill]] %s1076_s20  ;;  %s918_s24 = sadd.s32 %s839_s17, %s569_s23 }
   0xa   : > { %p30_p2 = scmp.ge.s32.totalorder %s1078_s21, 2  ;;  %p68_p3 = scmp.eq.s32.totalorder %s847_s19, 0 }
   0xb   : > { %p73_p4 = scmp.ne.s32.totalorder %s823_s13, %s819_s12  ;;  %p74_p5 = scmp.eq.s32.totalorder %s568_s22, 0 }
   0xc   : > { %s1080_s21 = smov (%p30_p2, %s1078_s21), 0  ;;  %p926_p6 = por %p68_p3, %p67_p1 }
   0xd   : > { %1063 = sst [smem:[#allocation7_spill]] %s1080_s21  ;;  %p930_p7 = por %p74_p5, %p73_p4 }
   0xe   : > { %s570_s27 = sshll.u32 %s1080_s21, 1  ;;  %s60_s30 = sadd.s32 1, %s827_s14 }
   0xf   : > { %s56_s28 = sadd.s32 %s570_s27, %s1076_s20  ;;  %p574_p9 = scmp.ge.s32.totalorder %s847_s19, 4 }
  0x10   : > { %s57_s29 = ssub.s32 %s918_s24, %s56_s28  ;;  %s156_s5 = sand.u32 (!%p574_p9), 1, %s827_s14  }
  0x11   : > { %p58_p8 = scmp.eq.s32.totalorder %s57_s29, 0  ;;  %152 = sbr.rel (%p574_p9) target bundleno = 30 (0x1e), region = 20 }
  0x12   : > { %s664_s6 = sshll.u32 (!%p574_p9), %s918_s24, 7  ;;  %s575_s7 = sshll.u32 (!%p574_p9), %s156_s5, 7 }
  0x13   : > { %s939_s4 = scalar_select %p58_p8, %s827_s14, %s60_s30  }
  0x14   : > { %s168_s10 = scalar_lea.hbm (!%p574_p9), %s1057_s1, %s664_s6  ;;  %s160_s12 = scalar_lea.vmem (!%p574_p9), [#allocation2], %s575_s7 }
  0x15   : > { %s169_s11 = sshll.u32 (!%p574_p9), %s168_s10, 4  ;;  %s171_s22 = sshll.u32 (!%p574_p9), %s160_s12, 4  ;;  %s170_s11 = int_to_ptr.hbm [resolvable:$true] %s169_s11  ;;  %s172_s22 = int_to_ptr.vmem [resolvable:$true] %s171_s22 }
  0x16   : > { %s157_s23 = scalar_lea.sflag [#allocation3], %s156_s5  ;;  %s849_s27 = smov 128  }
  0x17   : > { %s850_s28 = smov 8   ;;  %180 = sbr.rel (!%p926_p6) target bundleno = 30 (0x1e), region = 28 }
  0x18   : > { %684 = dma.hbm_to_vmem [thread:$0]  (%p926_p6), %s170_s11, 2048, %s172_s22, %s157_s23, %s849_s27, %s849_s27, %s850_s28  }
  0x19   : > { %s580_s29 = sshll.u32 (%p926_p6), %s156_s5, 4  ;;  %s582_s30 = sshll.u32 (%p926_p6), %s918_s24, 3 }
  0x1a   : > { %s188_s6 = scalar_lea.vmem (%p926_p6), %s1058_s2, %s582_s30  ;;  %s184_s7 = scalar_lea.vmem (%p926_p6), [#allocation4], %s580_s29 }
  0x1b   : > { %v219_v0 = vld [vmem:[%s188_s6] sm:$0xff] (%p926_p6) }
  0x1c   : > { %v221_v1 = vld [vmem:[%s188_s6 + $0x20] sm:$0xff]  ;;  %220 = vst [vmem:[%s184_s7] sm:$0xff] %v219_v0 }
  0x1d   : > { %222 = vst [vmem:[%s184_s7 + $0x8] sm:$0xff] %v221_v1 }
  0x1e PF: > { %p583_p10 = scmp.ge.s32.totalorder %s847_s19, 1  ;;  %p227_p11 = scmp.lt.s32.totalorder %s847_s19, 5 }
  0x20   : > { %p228_p12 = pnand %p583_p10, %p227_p11 }
  0x21   : > { %s233_s24 = sand.u32 (!%p228_p12), 1, %s823_s13  }
  0x22   : > { %231 = sbr.rel (%p228_p12) target bundleno = 404 (0x194), region = 66  ;;  %s584_s25 = sshll.u32 (!%p228_p12), %s233_s24, 7 }
  0x23   : > { %s234_s5 = scalar_lea.sflag (!%p228_p12), [#allocation3], %s233_s24  ;;  %s958_s20 = scalar_lea.vmem (!%p228_p12), [#allocation2], %s584_s25 }
  0x27   : > { %814 = dma.done.wait (%p930_p7), %s234_s5, 2048  }
  0x28   : > { %816 = vsyncadd (%p930_p7), %s234_s5, 4294965248  ;;  %s585_s21 = sshll.u32 %s233_s24, 4  ;;  %p277_p13 = scmp.lt.s32.totalorder %s835_s16, 1 }
  0x29   : > { %s971_s12 = scalar_lea.vmem [#allocation4], %s585_s21  ;;  %p588_p0 = scmp.ne.s32.totalorder %s831_s15, 0 }
  0x2a   : > { %s1082_s16 = smov (!%p277_p13, %s835_s16), 1 }
  0x2b   : > { %s665_s8 = sshll.u32 %s1082_s16, 5  ;;  %285 = sbr.rel (%p588_p0) target bundleno = 53 (0x35), region = 78 }
  0x2c   : > { %s969_s11 = scalar_lea.vmem %s1059_s3, %s665_s8 }
  0x30   : > { %v851_v2 = vmov 0.0  }
  0x31   : > { %286 = vst [vmem:[%s969_s11] sm:$0xff] %v851_v2 }
  0x32   : > { %287 = vst [vmem:[%s969_s11 + $0x8] sm:$0xff] %v851_v2 }
  0x33   : > { %288 = vst [vmem:[%s969_s11 + $0x10] sm:$0xff] %v851_v2 }
  0x34   : > { %289 = vst [vmem:[%s969_s11 + $0x18] sm:$0xff] %v851_v2 }
  0x35 PF: > { %v655_v3 = vld [vmem:[%s958_s20 + $0x70] sm:$0xf]  ;;  %v683_v4 = vld [vmem:[%s958_s20 + $0x74] sm:$0xf0]  ;;  %v682_v5 = vld [vmem:[%s958_s20 + $0x74] sm:$0xf] }
  0x36   : > { %v656_v6 = vor.u32 %v683_v4, %v655_v3  ;;  %v657_v7 = vld [vmem:[%s958_s20 + $0x78] sm:$0xf0]  ;;  %v647_v9 = vld [vmem:[%s958_s20 + $0x60] sm:$0xf]  ;;  %v681_v10 = vld [vmem:[%s958_s20 + $0x64] sm:$0xf0] }
  0x37   : > { %v660_v8 = vor.u32 %v682_v5, %v657_v7  ;;  %v680_v11 = vld [vmem:[%s958_s20 + $0x64] sm:$0xf]  ;;  %v649_v12 = vld [vmem:[%s958_s20 + $0x68] sm:$0xf0]  ;;  %v648_v13 = vor.u32 %v681_v10, %v647_v9  ;;  %v639_v15 = vld [vmem:[%s958_s20 + $0x50] sm:$0xf] }
  0x38   : > { %398 = vmatpush.bf16.xpose.msra.mxu0 %v656_v6  ;;  %435 = vmatpush.bf16.msra.mxu2 %v656_v6  ;;  %v652_v14 = vor.u32 %v680_v11, %v649_v12  ;;  %v679_v16 = vld [vmem:[%s958_s20 + $0x54] sm:$0xf0]  ;;  %v678_v17 = vld [vmem:[%s958_s20 + $0x54] sm:$0xf]  ;;  %v641_v18 = vld [vmem:[%s958_s20 + $0x58] sm:$0xf0] }
  0x39   : > { %412 = vmatpush.bf16.xpose.msra.mxu1 %v660_v8  ;;  %449 = vmatpush.bf16.msra.mxu3 %v660_v8  ;;  %v640_v19 = vor.u32 %v679_v16, %v639_v15  ;;  %v644_v20 = vor.u32 %v678_v17, %v641_v18  ;;  %v631_v21 = vld [vmem:[%s958_s20 + $0x40] sm:$0xf]  ;;  %v677_v22 = vld [vmem:[%s958_s20 + $0x44] sm:$0xf0]  ;;  %v676_v23 = vld [vmem:[%s958_s20 + $0x44] sm:$0xf] }
  0x3a   : > { %v633_v24 = vld [vmem:[%s958_s20 + $0x48] sm:$0xf0]  ;;  %v632_v25 = vor.u32 %v677_v22, %v631_v21  ;;  %v623_v27 = vld [vmem:[%s958_s20 + $0x30] sm:$0xf]  ;;  %v675_v28 = vld [vmem:[%s958_s20 + $0x34] sm:$0xf0] }
  0x3b   : > { %v636_v26 = vor.u32 %v676_v23, %v633_v24  ;;  %v674_v29 = vld [vmem:[%s958_s20 + $0x34] sm:$0xf]  ;;  %v625_v30 = vld [vmem:[%s958_s20 + $0x38] sm:$0xf0]  ;;  %v624_v31 = vor.u32 %v675_v28, %v623_v27  ;;  %v615_v33 = vld [vmem:[%s958_s20 + $0x20] sm:$0xf] }
  0x3c   : > { %436 = vmatpush.bf16.msra.mxu2 %v648_v13  ;;  %v628_v32 = vor.u32 %v674_v29, %v625_v30  ;;  %v673_v34 = vld [vmem:[%s958_s20 + $0x24] sm:$0xf0]  ;;  %v672_v35 = vld [vmem:[%s958_s20 + $0x24] sm:$0xf]  ;;  %v617_v36 = vld [vmem:[%s958_s20 + $0x28] sm:$0xf0] }
  0x3d   : > { %450 = vmatpush.bf16.msra.mxu3 %v652_v14  ;;  %v616_v37 = vor.u32 %v673_v34, %v615_v33  ;;  %v620_v38 = vor.u32 %v672_v35, %v617_v36  ;;  %v607_v39 = vld [vmem:[%s958_s20 + $0x10] sm:$0xf]  ;;  %v671_v40 = vld [vmem:[%s958_s20 + $0x14] sm:$0xf0]  ;;  %v670_v41 = vld [vmem:[%s958_s20 + $0x14] sm:$0xf] }
  0x3e   : > { %v609_v42 = vld [vmem:[%s958_s20 + $0x18] sm:$0xf0]  ;;  %v608_v43 = vor.u32 %v671_v40, %v607_v39  ;;  %v599_v45 = vld [vmem:[%s958_s20] sm:$0xf]  ;;  %v669_v46 = vld [vmem:[%s958_s20 + $0x4] sm:$0xf0] }
  0x3f   : > { %v612_v44 = vor.u32 %v670_v41, %v609_v42  ;;  %v668_v47 = vld [vmem:[%s958_s20 + $0x4] sm:$0xf]  ;;  %v601_v48 = vld [vmem:[%s958_s20 + $0x8] sm:$0xf0]  ;;  %v600_v49 = vor.u32 %v669_v46, %v599_v45  ;;  %v591_v51 = vld [vmem:[%s1056_s0] sm:$0xf] }
  0x40   : > { %399 = vmatpush.bf16.xpose.msra.mxu0 %v648_v13  ;;  %437 = vmatpush.bf16.msra.mxu2 %v640_v19  ;;  %v604_v50 = vor.u32 %v668_v47, %v601_v48  ;;  %v667_v52 = vld [vmem:[%s1056_s0 + $0x4] sm:$0xf0]  ;;  %v666_v53 = vld [vmem:[%s1056_s0 + $0x4] sm:$0xf]  ;;  %v593_v54 = vld [vmem:[%s1056_s0 + $0x8] sm:$0xf0] }
  0x41   : > { %413 = vmatpush.bf16.xpose.msra.mxu1 %v652_v14  ;;  %451 = vmatpush.bf16.msra.mxu3 %v644_v20  ;;  %v592_v55 = vor.u32 %v667_v52, %v591_v51  ;;  %v596_v56 = vor.u32 %v666_v53, %v593_v54  ;;  %v426_v61 = vld [vmem:[%s971_s12] sm:$0xff]  ;;  %v427_v63 = vld [vmem:[%s971_s12 + $0x8] sm:$0xff] }
  0x42   : > { %v431_v4 = vld [vmem:[%s969_s11] sm:$0xff]  ;;  %v432_v5 = vld [vmem:[%s969_s11 + $0x8] sm:$0xff]  ;;  %v433_v10 = vld [vmem:[%s969_s11 + $0x10] sm:$0xff] }
  0x43   : > { %v434_v11 = vld [vmem:[%s969_s11 + $0x18] sm:$0xff] }
  0x44   : > { %438 = vmatpush.bf16.msra.mxu2 %v632_v25 }
  0x45   : > { %452 = vmatpush.bf16.msra.mxu3 %v636_v26 }
  0x48   : > { %400 = vmatpush.bf16.xpose.msra.mxu0 %v640_v19  ;;  %439 = vmatpush.bf16.msra.mxu2 %v624_v31 }
  0x49   : > { %414 = vmatpush.bf16.xpose.msra.mxu1 %v644_v20  ;;  %453 = vmatpush.bf16.msra.mxu3 %v628_v32 }
  0x4c   : > { %440 = vmatpush.bf16.msra.mxu2 %v616_v37 }
  0x4d   : > { %454 = vmatpush.bf16.msra.mxu3 %v620_v38 }
  0x50   : > { %401 = vmatpush.bf16.xpose.msra.mxu0 %v632_v25  ;;  %441 = vmatpush.bf16.msra.mxu2 %v608_v43 }
  0x51   : > { %415 = vmatpush.bf16.xpose.msra.mxu1 %v636_v26  ;;  %455 = vmatpush.bf16.msra.mxu3 %v612_v44 }
  0x54   : > { %442 = vmatpush.bf16.msra.mxu2 %v600_v49 }
  0x55   : > { %456 = vmatpush.bf16.msra.mxu3 %v604_v50 }
  0x58   : > { %402 = vmatpush.bf16.xpose.msra.mxu0 %v624_v31 }
  0x59   : > { %416 = vmatpush.bf16.xpose.msra.mxu1 %v628_v32 }
  0x60   : > { %403 = vmatpush.bf16.xpose.msra.mxu0 %v616_v37 }
  0x61   : > { %417 = vmatpush.bf16.xpose.msra.mxu1 %v620_v38 }
  0x68   : > { %404 = vmatpush.bf16.xpose.msra.mxu0 %v608_v43 }
  0x69   : > { %418 = vmatpush.bf16.xpose.msra.mxu1 %v612_v44 }
  0x70   : > { %405 = vmatpush.bf16.xpose.msra.mxu0 %v600_v49 }
  0x71   : > { %419 = vmatpush.bf16.xpose.msra.mxu1 %v604_v50 }
  0x77   : > { %406 = vmatmul.bf16.vlgmr.msra.gmra.mxu0 %v592_v55 }
  0x78   : > { %420 = vmatmul.bf16.vlgmr.msra.gmra.mxu1 %v596_v56 }
  0xf4   : > { %v407_v57 = vpop.f32.mrf.mxu0 }
  0xf5   : > { %v421_v58 = vpop.f32.mrf.mxu1 }
  0xf6   : > { %v422_v59 = vadd.f32 %v421_v58, %v407_v57 }
  0xf8   : > { %v428_v1 = vsub.f32 %v422_v59, %v426_v61 }
  0xfc   : > { %v409_v60 = vpop.f32.mrf.mxu0 }
  0xfd   : > { %v423_v62 = vpop.f32.mrf.mxu1 }
  0xfe   : > { %v424_v0 = vadd.f32 %v423_v62, %v409_v60 }
 0x100   : > { %v429_v2 = vsub.f32 %v424_v0, %v427_v63 }
 0x102   : > { %v430_v3 = vpack.c.bf16 %v429_v2, %v428_v1 }
 0x104   : > { %443 = vmatmul.bf16.vlgmr.msra.gmra.mxu2 %v430_v3  ;;  %457 = vmatmul.bf16.vlgmr.msra.gmra.mxu3 %v430_v3 }
 0x187   : > { %v444_v6 = vpop.f32.mrf.mxu2  ;;  %v458_v7 = vpop.f32.mrf.mxu3 }
 0x188   : > { %v463_v8 = vadd.f32 %v444_v6, %v431_v4  ;;  %v464_v9 = vadd.f32 %v458_v7, %v432_v5 }
 0x18a   : > { %467 = vst [vmem:[%s969_s11] sm:$0xff] %v463_v8 }
 0x18b   : > { %468 = vst [vmem:[%s969_s11 + $0x8] sm:$0xff] %v464_v9 }
 0x18f   : > { %v446_v12 = vpop.f32.mrf.mxu2  ;;  %v460_v13 = vpop.f32.mrf.mxu3 }
 0x190   : > { %v465_v14 = vadd.f32 %v446_v12, %v433_v10  ;;  %v466_v15 = vadd.f32 %v460_v13, %v434_v11 }
 0x192   : > { %469 = vst [vmem:[%s969_s11 + $0x10] sm:$0xff] %v465_v14 }
 0x193   : > { %470 = vst [vmem:[%s969_s11 + $0x18] sm:$0xff] %v466_v15 }
 0x194 PF: > { %s16_s19 = sadd.s32 1, %s847_s19   ;;  %s1066_s30 = sld [smem:[#allocation6_spill]] }
 0x195   : > { %p13_p1 = scmp.ge.s32.totalorder %s16_s19, 6   ;;  %s1067_s6 = sld [smem:[#allocation7_spill]] }
 0x196   : > { %s1068_s12 = smov %s823_s13  ;;  %s1069_s13 = smov %s827_s14 }
 0x197   : > { %s1070_s14 = smov %s939_s4  ;;  %s1071_s15 = smov %s839_s17 }
 0x198   : > { %s1072_s16 = smov %s843_s18  ;;  %15 = sbr.rel (!%p13_p1) target bundleno = 5 (0x5), region = 122 }
 0x19a   : > { %s1073_s17 = smov %s1066_s30 }
 0x19b   : > { %s1074_s18 = smov %s1067_s6 }
 0x19d   :  { %492 = vsyncpa [#allocation3], 1 }
 0x19e   :  { %494 = vsyncpa [#allocation3 + $0x1], 1 }

</bundles_post_ra>
